<compile_context>
chip_gen: v7x
topology: tpu7x:2x2x1
jax: 0.10.0
libtpu: 0.0.40
codegen_flags: <defaults>
</compile_context>

<pallas_src>
import functools
import math

import jax
import jax.numpy as jnp
from jax.experimental import pallas as pl
from jax.experimental.pallas import tpu as pltpu


_NUM_FREQS = 4
_FEAT_DIM = 3 + 3 * 2 * _NUM_FREQS + 1   # dirs + sin/cos per freq + mip = 28
_HIDDEN = 32
_OUT_C = 3
_EPS = float(jnp.finfo(jnp.float32).eps)


def _round_up(x, m):
    return ((x + m - 1) // m) * m


# ----------------------------------------------------------------------------
# Pallas kernel: fused encoding + 2-layer MLP, feature-major layout.
#   input : stacked (10, T) f32  = [viewdirs(3); sin(pi v)(3); cos(pi v)(3); mip(1)]
#   weights: w1t (H,F) bf16, b1t (H,1) f32, w2t (C,H) bf16, b2t (C,1) f32
#   output : (C, T) f32   (rays on the lane axis -> dense stores)
# ----------------------------------------------------------------------------
def _bg_mlp_kernel(x_ref, w1_ref, b1_ref, w2_ref, b2_ref, o_ref):
    v = x_ref[0:3, :]                                 # (3, T) f32
    s = x_ref[3:6, :]                                 # sin(pi * v)
    c = x_ref[6:9, :]                                 # cos(pi * v)
    mip = x_ref[9:10, :]                              # 0.5 * log2(clamp(sa))

    # Higher frequencies via exact double-angle recurrence (pure VPU, f32):
    #   sin(2a) = 2 sin a cos a ; cos(2a) = 1 - 2 sin^2 a
    parts = [v, s, c]
    for _ in range(1, _NUM_FREQS):                    # unrolled at trace time
        s, c = 2.0 * s * c, 1.0 - 2.0 * s * s
        parts.append(s)
        parts.append(c)
    parts.append(mip)

    # Feature block assembled in vregs — no VMEM scratch round trip.
    feat = jnp.concatenate(parts, axis=0)             # (F, T) f32

    # Layer 1: (H, F) @ (F, T) on the MXU, bf16 operands, f32 accumulation.
    h = jnp.dot(w1_ref[...], feat.astype(jnp.bfloat16),
                preferred_element_type=jnp.float32)
    h = jnp.maximum(h + b1_ref[...], 0.0)             # (H, T) f32, ReLU

    # Layer 2: (C, H) @ (H, T) -> (C, T); bias + sigmoid (activation_fn) in f32.
    y = jnp.dot(w2_ref[...], h.astype(jnp.bfloat16),
                preferred_element_type=jnp.float32)
    o_ref[...] = jax.nn.sigmoid(y + b2_ref[...])


# ----------------------------------------------------------------------------
# Fused wrapper: prep (trig / mip / stack / pad), pallas_call, output slice+T —
# all under one jit so there are no standalone HBM passes between them.
# ----------------------------------------------------------------------------
@functools.partial(jax.jit, static_argnames=("tile_n",))
def _multibg_forward(viewdirs, saSample, w1, b1, w2, b2, *, tile_n=16384):
    """viewdirs (N,3), saSample (N,1) -> colors (N,3)."""
    N = viewdirs.shape[0]
    F, H = w1.shape
    C = w2.shape[1]

    # Lane-aligned tile; shrink only so the grid stays >= 2 steps (both v7x
    # TensorCores get work via the "parallel" axis) without excessive padding.
    tile_n = max(128, min(tile_n, _round_up(pl.cdiv(N, 2), 128)))
    n_pad = pl.cdiv(N, tile_n) * tile_n

    # Single consolidated feature-major input stream (one DMA per grid step).
    v_t = viewdirs.astype(jnp.float32).T                        # (3, N)
    mip = 0.5 * jnp.log2(
        jnp.maximum(saSample.astype(jnp.float32), _EPS)).reshape(1, -1)
    stacked = jnp.concatenate(
        [v_t, jnp.sin(math.pi * v_t), jnp.cos(math.pi * v_t), mip], axis=0)
    if n_pad != N:                                              # (10, n_pad)
        stacked = jnp.pad(stacked, ((0, 0), (0, n_pad - N)))

    # Transposed weights for the feature-major matmuls; bf16 for the MXU,
    # biases stay f32 (v5e VPU/EUP have no bf16 path).
    w1_t = w1.T.astype(jnp.bfloat16)                            # (H, F)
    b1_t = b1.astype(jnp.float32).reshape(H, 1)                 # (H, 1)
    w2_t = w2.T.astype(jnp.bfloat16)                            # (C, H)
    b2_t = b2.astype(jnp.float32).reshape(C, 1)                 # (C, 1)

    grid = (n_pad // tile_n,)

    cost = pl.CostEstimate(
        flops=2 * n_pad * (F * H + H * C) + 12 * n_pad,         # matmuls + recurrence
        transcendentals=n_pad * C,                              # sigmoid
        bytes_accessed=n_pad * (10 * 4 + C * 4)                 # stacked in + out
        + (H * F + C * H) * 2 + (H + C) * 4,                    # resident weights
    )

    out_t = pl.pallas_call(
        _bg_mlp_kernel,
        out_shape=jax.ShapeDtypeStruct((C, n_pad), jnp.float32),
        grid=grid,
        in_specs=[
            pl.BlockSpec((10, tile_n), lambda i: (0, i)),       # stacked features
            pl.BlockSpec((H, F), lambda i: (0, 0)),             # w1^T (VMEM-resident)
            pl.BlockSpec((H, 1), lambda i: (0, 0)),             # b1^T
            pl.BlockSpec((C, H), lambda i: (0, 0)),             # w2^T
            pl.BlockSpec((C, 1), lambda i: (0, 0)),             # b2^T
        ],
        out_specs=pl.BlockSpec((C, tile_n), lambda i: (0, i)),
        compiler_params=pltpu.CompilerParams(
            dimension_semantics=("parallel",),
            # ~10 MB working set at tile_n=16384: fits every chip; v6e/v5e can
            # sweep tile_n higher and raise this (128 MiB physical there).
            vmem_limit_bytes=32 * 1024 * 1024,
        ),
        cost_estimate=cost,
    )(stacked, w1_t, b1_t, w2_t, b2_t)

    # Padded lanes hold garbage sigmoid outputs — the slice discards them.
    return out_t[:, :N].T                                       # (N, C) f32


# ----------------------------------------------------------------------------
# Representative background parameters (the bg submodule itself is not in the
# spec; MultiBG only dispatches to it).
# ----------------------------------------------------------------------------
def _init_bg_params(key):
    k1, k2, k3, k4 = jax.random.split(key, 4)
    w1 = jax.random.normal(k1, (_FEAT_DIM, _HIDDEN), jnp.float32) * (
        1.0 / math.sqrt(_FEAT_DIM))
    b1 = 0.01 * jax.random.normal(k2, (1, _HIDDEN), jnp.float32)
    w2 = jax.random.normal(k3, (_HIDDEN, _OUT_C), jnp.float32) * (
        1.0 / math.sqrt(_HIDDEN))
    b2 = 0.01 * jax.random.normal(k4, (1, _OUT_C), jnp.float32)
    return dict(w1=w1, b1=b1, w2=w2, b2=b2)


class MultiBG:
    """JAX/Pallas port of modules/dual_bg.py::MultiBG (forward path only)."""

    def __init__(self, bg_params_list):
        self.bgs = list(bg_params_list)
        self.bg_index = 0   # static python dispatch, same as the torch module

    def forward(self, viewdirs, saSample, max_level=None):
        # TODO(synk): max_level clamps the mip pyramid in the real envmap bg;
        # the representative MLP background has no mip pyramid so it is ignored.
        p = self.bgs[self.bg_index]
        return _multibg_forward(viewdirs, saSample,
                                p["w1"], p["b1"], p["w2"], p["b2"])

    __call__ = forward


# ----------------------------------------------------------------------------
# Reference (plain JAX, f32) and smoke test
# ----------------------------------------------------------------------------
def _reference_forward(params, viewdirs, saSample):
    v = viewdirs.astype(jnp.float32)
    parts = [v]
    for k in range(_NUM_FREQS):
        f = (2.0 ** k) * math.pi
        parts.append(jnp.sin(f * v))
        parts.append(jnp.cos(f * v))
    parts.append(0.5 * jnp.log2(jnp.maximum(saSample, _EPS)))
    feats = jnp.concatenate(parts, axis=-1)                    # (N, 28)
    h = jnp.maximum(feats @ params["w1"] + params["b1"], 0.0)
    return jax.nn.sigmoid(h @ params["w2"] + params["b2"])


if __name__ == "__main__":
    key = jax.random.PRNGKey(0)
    k_bg0, k_bg1, k_dirs, k_sa = jax.random.split(key, 4)

    # two background sub-models, as in MultiBG(bgs=[bg0, bg1])
    multi_bg = MultiBG([_init_bg_params(k_bg0), _init_bg_params(k_bg1)])
    multi_bg.bg_index = 0

    N = 1000  # exercises cdiv padding and a 2-step "parallel" grid
    viewdirs = jax.random.normal(k_dirs, (N, 3), jnp.float32)
    viewdirs = viewdirs / jnp.linalg.norm(viewdirs, axis=-1, keepdims=True)
    saSample = jax.random.uniform(k_sa, (N, 1), jnp.float32,
                                  minval=1e-5, maxval=1e-2)

    out = multi_bg(viewdirs, saSample, max_level=None)
    out = jax.block_until_ready(out)

    ref = _reference_forward(multi_bg.bgs[multi_bg.bg_index], viewdirs, saSample)
    assert out.shape == (N, 3)
    err = float(jnp.max(jnp.abs(out - ref)))
    # bf16 MXU operands vs f32 reference -> loosened tolerance on sigmoid outputs.
    assert err < 3e-2, f"max abs err vs reference: {err}"

    print("KERNEL_OK")
</pallas_src>

<mosaic_0001>
module attributes {stable_mosaic.version = 11 : i64} {
  func.func @_bg_mlp_kernel(%arg0: i32, %arg1: memref<10x512xf32, #tpu.memory_space<vmem>>, %arg2: memref<32x28xbf16, #tpu.memory_space<vmem>>, %arg3: memref<32x1xf32, #tpu.memory_space<vmem>>, %arg4: memref<3x32xbf16, #tpu.memory_space<vmem>>, %arg5: memref<3x1xf32, #tpu.memory_space<vmem>>, %arg6: memref<3x512xf32, #tpu.memory_space<vmem>>) attributes {dimension_semantics = [#tpu.dimension_semantics<parallel>], iteration_bounds = array<i64: 2>, scalar_prefetch = 0 : i64, scratch_operands = 0 : i64, tpu.core_type = #tpu.core_type<tc>, window_params = [{transform_indices = @transform_0, window_bounds = array<i64: 10, 512>}, {pipeline_mode = #tpu.pipeline_mode<synchronous>, transform_indices = @transform_1, window_bounds = array<i64: 32, 28>}, {pipeline_mode = #tpu.pipeline_mode<synchronous>, transform_indices = @transform_2, window_bounds = array<i64: 32, 1>}, {pipeline_mode = #tpu.pipeline_mode<synchronous>, transform_indices = @transform_3, window_bounds = array<i64: 3, 32>}, {pipeline_mode = #tpu.pipeline_mode<synchronous>, transform_indices = @transform_4, window_bounds = array<i64: 3, 1>}, {transform_indices = @transform_5, window_bounds = array<i64: 3, 512>}]} {
    %c0 = arith.constant 0 : index
    %c0_0 = arith.constant 0 : index
    %0 = vector.load %arg1[%c0, %c0_0] : memref<10x512xf32, #tpu.memory_space<vmem>>, vector<3x512xf32>
    %c3 = arith.constant 3 : index
    %c0_1 = arith.constant 0 : index
    %1 = vector.load %arg1[%c3, %c0_1] : memref<10x512xf32, #tpu.memory_space<vmem>>, vector<3x512xf32>
    %c6 = arith.constant 6 : index
    %c0_2 = arith.constant 0 : index
    %2 = vector.load %arg1[%c6, %c0_2] : memref<10x512xf32, #tpu.memory_space<vmem>>, vector<3x512xf32>
    %c9 = arith.constant 9 : index
    %c0_3 = arith.constant 0 : index
    %3 = vector.load %arg1[%c9, %c0_3] : memref<10x512xf32, #tpu.memory_space<vmem>>, vector<1x512xf32>
    %cst = arith.constant 2.000000e+00 : f32
    %4 = vector.broadcast %cst : f32 to vector<3x512xf32>
    %5 = arith.mulf %4, %1 : vector<3x512xf32>
    %6 = arith.mulf %5, %2 : vector<3x512xf32>
    %cst_4 = arith.constant 2.000000e+00 : f32
    %7 = vector.broadcast %cst_4 : f32 to vector<3x512xf32>
    %8 = arith.mulf %7, %1 : vector<3x512xf32>
    %9 = arith.mulf %8, %1 : vector<3x512xf32>
    %cst_5 = arith.constant 1.000000e+00 : f32
    %10 = vector.broadcast %cst_5 : f32 to vector<3x512xf32>
    %11 = arith.subf %10, %9 : vector<3x512xf32>
    %cst_6 = arith.constant 2.000000e+00 : f32
    %12 = vector.broadcast %cst_6 : f32 to vector<3x512xf32>
    %13 = arith.mulf %12, %6 : vector<3x512xf32>
    %14 = arith.mulf %13, %11 : vector<3x512xf32>
    %cst_7 = arith.constant 2.000000e+00 : f32
    %15 = vector.broadcast %cst_7 : f32 to vector<3x512xf32>
    %16 = arith.mulf %15, %6 : vector<3x512xf32>
    %17 = arith.mulf %16, %6 : vector<3x512xf32>
    %cst_8 = arith.constant 1.000000e+00 : f32
    %18 = vector.broadcast %cst_8 : f32 to vector<3x512xf32>
    %19 = arith.subf %18, %17 : vector<3x512xf32>
    %cst_9 = arith.constant 2.000000e+00 : f32
    %20 = vector.broadcast %cst_9 : f32 to vector<3x512xf32>
    %21 = arith.mulf %20, %14 : vector<3x512xf32>
    %22 = arith.mulf %21, %19 : vector<3x512xf32>
    %cst_10 = arith.constant 2.000000e+00 : f32
    %23 = vector.broadcast %cst_10 : f32 to vector<3x512xf32>
    %24 = arith.mulf %23, %14 : vector<3x512xf32>
    %25 = arith.mulf %24, %14 : vector<3x512xf32>
    %cst_11 = arith.constant 1.000000e+00 : f32
    %26 = vector.broadcast %cst_11 : f32 to vector<3x512xf32>
    %27 = arith.subf %26, %25 : vector<3x512xf32>
    %28 = tpu.concatenate %0, %1, %2, %6, %11, %14, %19, %22, %27, %3 in 0 : vector<3x512xf32>, vector<3x512xf32>, vector<3x512xf32>, vector<3x512xf32>, vector<3x512xf32>, vector<3x512xf32>, vector<3x512xf32>, vector<3x512xf32>, vector<3x512xf32>, vector<1x512xf32> -> vector<28x512xf32>
    %c0_12 = arith.constant 0 : index
    %c0_13 = arith.constant 0 : index
    %29 = vector.load %arg2[%c0_12, %c0_13] : memref<32x28xbf16, #tpu.memory_space<vmem>>, vector<32x28xbf16>
    %30 = arith.truncf %28 : vector<28x512xf32> to vector<28x512xbf16>
    %cst_14 = arith.constant dense<0.000000e+00> : vector<32x512xf32>
    %31 = tpu.matmul %29, %30, %cst_14 {dimension_numbers = #tpu.dot_dimension_numbers<[1], [0], [0], [1], [0, 0, 1, 1], [], []>} : vector<32x28xbf16>, vector<28x512xbf16>, vector<32x512xf32> -> vector<32x512xf32>
    %c0_15 = arith.constant 0 : index
    %c0_16 = arith.constant 0 : index
    %32 = vector.load %arg3[%c0_15, %c0_16] : memref<32x1xf32, #tpu.memory_space<vmem>>, vector<32x1xf32>
    %33 = vector.broadcast %32 : vector<32x1xf32> to vector<32x512xf32>
    %34 = arith.addf %31, %33 : vector<32x512xf32>
    %cst_17 = arith.constant 0.000000e+00 : f32
    %35 = vector.broadcast %cst_17 : f32 to vector<32x512xf32>
    %36 = arith.maximumf %34, %35 : vector<32x512xf32>
    %c0_18 = arith.constant 0 : index
    %c0_19 = arith.constant 0 : index
    %37 = vector.load %arg4[%c0_18, %c0_19] : memref<3x32xbf16, #tpu.memory_space<vmem>>, vector<3x32xbf16>
    %38 = arith.truncf %36 : vector<32x512xf32> to vector<32x512xbf16>
    %cst_20 = arith.constant dense<0.000000e+00> : vector<3x512xf32>
    %39 = tpu.matmul %37, %38, %cst_20 {dimension_numbers = #tpu.dot_dimension_numbers<[1], [0], [0], [1], [0, 0, 1, 1], [], []>} : vector<3x32xbf16>, vector<32x512xbf16>, vector<3x512xf32> -> vector<3x512xf32>
    %c0_21 = arith.constant 0 : index
    %c0_22 = arith.constant 0 : index
    %40 = vector.load %arg5[%c0_21, %c0_22] : memref<3x1xf32, #tpu.memory_space<vmem>>, vector<3x1xf32>
    %41 = vector.broadcast %40 : vector<3x1xf32> to vector<3x512xf32>
    %42 = arith.addf %39, %41 : vector<3x512xf32>
    %43 = arith.negf %42 : vector<3x512xf32>
    %44 = math.exp %43 : vector<3x512xf32>
    %cst_23 = arith.constant 1.000000e+00 : f32
    %45 = vector.broadcast %cst_23 : f32 to vector<3x512xf32>
    %46 = arith.addf %45, %44 : vector<3x512xf32>
    %47 = arith.divf %45, %46 : vector<3x512xf32>
    %c0_24 = arith.constant 0 : index
    %c0_25 = arith.constant 0 : index
    %48 = vector.load %arg6[%c0_24, %c0_25] : memref<3x512xf32, #tpu.memory_space<vmem>>, vector<3x512xf32>
    tpu.vector_store %arg6[%c0_24, %c0_25], %47 {strides = array<i32>} : memref<3x512xf32, #tpu.memory_space<vmem>>, vector<3x512xf32>,
    return
  }
  func.func @transform_0(%arg0: i32) -> (i32, i32) {
    %c0_i32 = arith.constant 0 : i32
    %c0_i32_0 = arith.constant 0 : i32
    return %c0_i32, %arg0 : i32, i32
  }
  func.func @transform_1(%arg0: i32) -> (i32, i32) {
    %c0_i32 = arith.constant 0 : i32
    %c0_i32_0 = arith.constant 0 : i32
    %c0_i32_1 = arith.constant 0 : i32
    return %c0_i32, %c0_i32_0 : i32, i32
  }
  func.func @transform_2(%arg0: i32) -> (i32, i32) {
    %c0_i32 = arith.constant 0 : i32
    %c0_i32_0 = arith.constant 0 : i32
    %c0_i32_1 = arith.constant 0 : i32
    return %c0_i32, %c0_i32_0 : i32, i32
  }
  func.func @transform_3(%arg0: i32) -> (i32, i32) {
    %c0_i32 = arith.constant 0 : i32
    %c0_i32_0 = arith.constant 0 : i32
    %c0_i32_1 = arith.constant 0 : i32
    return %c0_i32, %c0_i32_0 : i32, i32
  }
  func.func @transform_4(%arg0: i32) -> (i32, i32) {
    %c0_i32 = arith.constant 0 : i32
    %c0_i32_0 = arith.constant 0 : i32
    %c0_i32_1 = arith.constant 0 : i32
    return %c0_i32, %c0_i32_0 : i32, i32
  }
  func.func @transform_5(%arg0: i32) -> (i32, i32) {
    %c0_i32 = arith.constant 0 : i32
    %c0_i32_0 = arith.constant 0 : i32
    return %c0_i32, %arg0 : i32, i32
  }
}

</mosaic_0001>

<bundles_post_ra>
// kernel: _multibg_forward.1
= control target key start
LH: loop header
LB: loop body
LE: loop exit
PB: predicated region body
PF: predicated region fallthrough
CT: control target
= control target key end

     0   :  { %s997_s18 = smov 0   ;;  %s999_s19 = smov 0   ;;  %s1177_s0 = inlined_call_operand.vmem [shape: f32[10,1024], index: 0, kind: input, shape index: {}]   ;;  %s1178_s1 = inlined_call_operand.vmem [shape: bf16[32,28], index: 1, kind: input, shape index: {}]   ;;  %s1179_s2 = inlined_call_operand.vmem [shape: f32[32,1], index: 2, kind: input, shape index: {}]   ;;  %s1180_s3 = inlined_call_operand.vmem [shape: bf16[3,32], index: 3, kind: input, shape index: {}]   ;;  %s1181_s4 = inlined_call_operand.vmem [shape: f32[3,1], index: 4, kind: input, shape index: {}]   ;;  %s1182_s5 = inlined_call_operand.vmem [shape: f32[3,1024], index: 5, kind: output, shape index: {}]  }
   0x1   :  { %s1001_s20 = smov 0  }
   0x2 LB: > { %s868_s21 = sadd.s32 4294967295, %s964_s20   ;;  %s1014_s22 = sadd.s32 1, %s964_s20   ;;  %s964_s20 = sphi %s1001_s20, %s1185_s20   ;;  %s960_s19 = sphi %s999_s19, %s1184_s19   ;;  %s956_s18 = sphi %s997_s18, %s1183_s18  }
   0x3   : > { %s19_s23 = ssub.s32 %s964_s20, %s1014_s22  ;;  %s22_s24 = sadd.s32 1, %s960_s19 }
   0x4   : > { %p20_p0 = scmp.eq.s32.totalorder %s19_s23, 0  ;;  %p29_p1 = scmp.ne.s32.totalorder %s960_s19, %s956_s18 }
   0x5   : > { %p30_p2 = scmp.eq.s32.totalorder %s964_s20, 0  ;;  %p871_p4 = scmp.ge.s32.totalorder %s964_s20, 2 }
   0x6   : > { %s1023_s25 = scalar_select %p20_p0, %s960_s19, %s22_s24  }
   0x7   : > { %p31_p3 = por %p30_p2, %p29_p1  ;;  %177 = sbr.rel (%p871_p4) target bundleno = 22 (0x16), region = 32 }
   0xe   : > { %180 = sbr.rel (!%p31_p3) target bundleno = 22 (0x16), region = 36  ;;  %s182_s26 = sand.u32 (%p31_p3), 1, %s960_s19  }
   0xf   : > { %s896_s27 = sshll.u32 (%p31_p3), %s964_s20, 5  ;;  %s872_s28 = sshll.u32 (%p31_p3), %s182_s26, 6 }
  0x10   : > { %s187_s6 = scalar_lea.vmem (%p31_p3), %s1177_s0, %s896_s27  ;;  %s184_s7 = scalar_lea.vmem (%p31_p3), [#allocation2], %s872_s28 }
  0x11   : > { %v200_v0 = vld [vmem:[%s187_s6] sm:$0xff] (%p31_p3)  ;;  %v202_v1 = vld [vmem:[%s187_s6 + $0x8] sm:$0xff] (%p31_p3)  ;;  %v204_v2 = vld [vmem:[%s187_s6 + $0x10] sm:$0xff] (%p31_p3) }
  0x12   : > { %201 = vst [vmem:[%s184_s7] sm:$0xff] (%p31_p3), %v200_v0  ;;  %203 = vst [vmem:[%s184_s7 + $0x8] sm:$0xff] (%p31_p3), %v202_v1  ;;  %v206_v3 = vld [vmem:[%s187_s6 + $0x18] sm:$0xff] (%p31_p3)  ;;  %v208_v4 = vld [vmem:[%s187_s6 + $0x40] sm:$0xff] (%p31_p3) }
  0x13   : > { %205 = vst [vmem:[%s184_s7 + $0x10] sm:$0xff] (%p31_p3), %v204_v2  ;;  %v210_v5 = vld [vmem:[%s187_s6 + $0x48] sm:$0xff] (%p31_p3)  ;;  %207 = vst [vmem:[%s184_s7 + $0x18] sm:$0xff] (%p31_p3), %v206_v3  ;;  %v212_v6 = vld [vmem:[%s187_s6 + $0x50] sm:$0xff] (%p31_p3) }
  0x14   : > { %209 = vst [vmem:[%s184_s7 + $0x20] sm:$0xff] (%p31_p3), %v208_v4  ;;  %211 = vst [vmem:[%s184_s7 + $0x28] sm:$0xff] (%p31_p3), %v210_v5  ;;  %v214_v7 = vld [vmem:[%s187_s6 + $0x58] sm:$0xff] (%p31_p3) }
  0x15   : > { %213 = vst [vmem:[%s184_s7 + $0x30] sm:$0xff] %v212_v6  ;;  %215 = vst [vmem:[%s184_s7 + $0x38] sm:$0xff] %v214_v7 }
  0x16 PF: > { %p875_p5 = scmp.ge.s32.totalorder %s964_s20, 1  ;;  %p220_p6 = scmp.lt.s32.totalorder %s964_s20, 3 }
  0x18   : > { %p221_p7 = pnand %p875_p5, %p220_p6 }
  0x19   : > { %s227_s8 = sand.u32 (!%p221_p7), 1, %s956_s18   ;;  %vm292_vm0 = vcmask (!%p221_p7), 1044480   ;;  %vm446_vm1 = vcmask (!%p221_p7), 1042432   ;;  %vm451_vm2 = vcmask (!%p221_p7), 1045504   ;;  %v426_v8 = vlaneseq (!%p221_p7)  ;;  %v496_v48 = vld [vmem:[%s1179_s2] sm:$0xff] (!%p221_p7)  ;;  %v497_v57 = vld [vmem:[%s1179_s2 + $0x8] sm:$0xff] (!%p221_p7) }
  0x1a   : > { %224 = sbr.rel (%p221_p7) target bundleno = 548 (0x224), region = 59  ;;  %s876_s9 = sshll.u32 (!%p221_p7), %s227_s8, 6  ;;  %vm456_vm3 = vcmask (!%p221_p7), 1040384   ;;  %vm461_vm4 = vcmask (!%p221_p7), 1043456   ;;  %v966_v12 = vmov (!%p221_p7), 0   ;;  %vm466_vm5 = vcmask (!%p221_p7), 1046528  }
  0x1b   : > { %s1034_s10 = scalar_lea.vmem (!%p221_p7), [#allocation2], %s876_s9  ;;  %581 = vmatprep.mubr.bf16.mxu0 (!%p221_p7), %v966_v12  ;;  %634 = vmatprep.mubr.bf16.mxu1 (!%p221_p7), %v966_v12  ;;  %v1051_v22 = vshrl.u32 (!%p221_p7), %v426_v8, 7  ;;  %vm471_vm6 = vcmask (!%p221_p7), 1041408   ;;  %v498_v62 = vld [vmem:[%s1179_s2 + $0x10] sm:$0xff] (!%p221_p7)  ;;  %vm530_vm7 = vcmask (!%p221_p7), 228352   ;;  %vm686_vm8 = vcmask (!%p221_p7), 261120  }
  0x1c   : > { %v263_v9 = vld [vmem:[%s1034_s10 + $0x8] sm:$0x7] (!%p221_p7)  ;;  %v267_v10 = vld [vmem:[%s1034_s10 + $0x8] sm:$0x38] (!%p221_p7)  ;;  %v271_v11 = vld [vmem:[%s1034_s10 + $0x8] sm:$0xc0] (!%p221_p7)  ;;  %922 = vset.pattern.permute.xlu0 (!%p221_p7), %v966_v12  ;;  %923 = vset.pattern.permute.xlu1 (!%p221_p7), %v966_v12 }
  0x1d   : > { %v275_v13 = vld [vmem:[%s1034_s10 + $0x28] sm:$0x1] (!%p221_p7)  ;;  %v281_v14 = vmul.f32 (!%p221_p7), 2.0, %v267_v10  ;;  %v296_v15 = vrot.slane (!%p221_p7), %v271_v11, 3  ;;  %v448_v16 = vsel (!%p221_p7), %vm446_vm1, %v263_v9, %v267_v10  ;;  %v265_v17 = vld [vmem:[%s1034_s10 + $0x18] sm:$0x7] (!%p221_p7)  ;;  %502 = vperm.xlu0 (!%p221_p7), %922, %v496_v48   ;;  %512 = vperm.xlu1 (!%p221_p7), %923, %v498_v62  }
  0x1e   : > { %v297_v18 = vrot.slane (!%p221_p7), %v275_v13, 3  ;;  %v1047_v19 = vsel (!%p221_p7), %vm451_vm2, %v448_v16, %v271_v11  ;;  %v269_v20 = vld [vmem:[%s1034_s10 + $0x18] sm:$0x38] (!%p221_p7)  ;;  %v273_v21 = vld [vmem:[%s1034_s10 + $0x18] sm:$0xc0] (!%p221_p7)  ;;  %v432_v34 = vsub.s32 (!%p221_p7), 1, %v1051_v22 }
  0x1f   : > { %v314_v23 = vmul.f32 (!%p221_p7), %v281_v14, %v267_v10  ;;  %v277_v24 = vld [vmem:[%s1034_s10 + $0x38] sm:$0x1] (!%p221_p7)  ;;  %v283_v25 = vmul.f32 (!%p221_p7), 2.0, %v269_v20  ;;  %v302_v26 = vrot.slane (!%p221_p7), %v273_v21, 3  ;;  %v450_v27 = vsel (!%p221_p7), %vm446_vm1, %v265_v17, %v269_v20  ;;  %v262_v28 = vld [vmem:[%s1034_s10] sm:$0x7] (!%p221_p7) }
  0x20   : > { %v298_v29 = vsel (!%p221_p7), %vm292_vm0, %v296_v15, %v297_v18  ;;  %v303_v30 = vrot.slane (!%p221_p7), %v277_v24, 3  ;;  %v1058_v31 = vsel (!%p221_p7), %vm451_vm2, %v450_v27, %v273_v21  ;;  %v266_v32 = vld [vmem:[%s1034_s10] sm:$0x38] (!%p221_p7)  ;;  %v270_v33 = vld [vmem:[%s1034_s10] sm:$0xc0] (!%p221_p7)  ;;  %v499_v9 = vld [vmem:[%s1179_s2 + $0x18] sm:$0xff] (!%p221_p7) }
  0x21   : > { %v310_v35 = vmul.f32 %v298_v29, %v281_v14  ;;  %v318_v36 = vsub.f32 1.0, %v314_v23  ;;  %v316_v37 = vmul.f32 %v283_v25, %v269_v20  ;;  %v274_v38 = vld [vmem:[%s1034_s10 + $0x20] sm:$0x1]  ;;  %v280_v39 = vmul.f32 2.0, %v266_v32  ;;  %v264_v7 = vld [vmem:[%s1034_s10 + $0x10] sm:$0x7]  ;;  %507 = vperm.xlu0 %922, %v497_v57   ;;  %517 = vperm.xlu1 %923, %v499_v9  }
  0x22   : > { %v304_v40 = vsel %vm292_vm0, %v302_v26, %v303_v30  ;;  %v293_v41 = vrot.slane %v270_v33, 3  ;;  %v294_v42 = vrot.slane %v274_v38, 3  ;;  %v447_v43 = vsel %vm446_vm1, %v262_v28, %v266_v32  ;;  %v268_v8 = vld [vmem:[%s1034_s10 + $0x10] sm:$0x38]  ;;  %v680_v15 = vld [vmem:[%s1181_s4] sm:$0x7] }
  0x23   : > { %v322_v44 = vmul.f32 2.0, %v310_v35  ;;  %v358_v45 = vrot.slane %v310_v35, 2  ;;  %v370_v46 = vrot.slane %v318_v36, 7  ;;  %v312_v47 = vmul.f32 %v304_v40, %v283_v25  ;;  %v272_v21 = vld [vmem:[%s1034_s10 + $0x10] sm:$0xc0]  ;;  %s877_s7 = sshll.u32 %s868_s21, 2 }
  0x24   : > { %v320_v49 = vsub.f32 1.0, %v316_v37  ;;  %v295_v50 = vsel %vm292_vm0, %v293_v41, %v294_v42  ;;  %v313_v51 = vmul.f32 %v280_v39, %v266_v32  ;;  %v1071_v52 = vsel %vm451_vm2, %v447_v43, %v270_v33  ;;  %v276_v23 = vld [vmem:[%s1034_s10 + $0x30] sm:$0x1]  ;;  %v1108_v37 = vld [vmem:[%s1034_s10 + $0x21] ss:$8 sm:$0xf] }
  0x25   : > { %v326_v53 = vmul.f32 %v322_v44, %v318_v36  ;;  %v330_v54 = vmul.f32 %v322_v44, %v310_v35  ;;  %v458_v55 = vsel %vm456_vm3, %v275_v13, %v358_v45  ;;  %v324_v56 = vmul.f32 2.0, %v312_v47  ;;  %683 = vperm.xlu0 %922, %v680_v15   ;;  %p256_p8 = scmp.lt.s32.totalorder %s877_s7, 7 }
  0x26   : > { %v463_v58 = vsel %vm461_vm4, %v458_v55, %v370_v46  ;;  %v360_v59 = vrot.slane %v312_v47, 2  ;;  %v372_v60 = vrot.slane %v320_v49, 7  ;;  %v1078_v61 = vmul.f32 %v295_v50, %v280_v39 }
  0x27   : > { %v334_v63 = vsub.f32 1.0, %v330_v54  ;;  %v338_v0 = vmul.f32 2.0, %v326_v53  ;;  %v382_v1 = vrot.slane %v326_v53, 4  ;;  %v328_v2 = vmul.f32 %v324_v56, %v320_v49  ;;  %s1187_s7 = smov (!%p256_p8, %s877_s7), 7 }
  0x28   : > { %v332_v3 = vmul.f32 %v324_v56, %v312_v47  ;;  %v460_v4 = vsel %vm456_vm3, %v277_v24, %v360_v59  ;;  %v317_v5 = vsub.f32 1.0, %v313_v51  ;;  %v321_v6 = vmul.f32 2.0, %v1078_v61  ;;  %s878_s8 = sshll.u32 %s1187_s7, 2 }
  0x29   : > { %v394_v10 = vrot.slane %v334_v63, 1  ;;  %v468_v11 = vsel %vm466_vm5, %v463_v58, %v382_v1  ;;  %v340_v13 = vmul.f32 2.0, %v328_v2  ;;  %v384_v14 = vrot.slane %v328_v2, 4  ;;  %s259_s20 = scalar_lea.vmem %s1182_s5, %s878_s8 }
  0x2a   : > { %v489_v16 = vpack.c.bf16 %v468_v11, %v1047_v19  ;;  %v336_v17 = vsub.f32 1.0, %v332_v3  ;;  %v465_v18 = vsel %vm461_vm4, %v460_v4, %v372_v60  ;;  %v1096_v20 = vmul.f32 %v321_v6, %v317_v5 }
  0x2b   : > { %v473_v24 = vsel %vm471_vm6, %v382_v1, %v394_v10  ;;  %v470_v25 = vsel %vm466_vm5, %v465_v18, %v384_v14  ;;  %v357_v26 = vrot.slane %v1078_v61, 2  ;;  %v369_v27 = vrot.slane %v317_v5, 7 }
  0x2c   : > { %549 = vmatprep.subr.bf16.mxu0 %v489_v16  ;;  %v396_v28 = vrot.slane %v336_v17, 1  ;;  %v491_v19 = vpack.c.bf16 %v470_v25, %v1058_v31  ;;  %v381_v29 = vrot.slane %v1096_v20, 4  ;;  %v282_v30 = vmul.f32 2.0, %v268_v8 }
  0x2d   : > { %v457_v32 = vsel %vm456_vm3, %v274_v38, %v357_v26  ;;  %v299_v33 = vrot.slane %v272_v21, 3  ;;  %v300_v35 = vrot.slane %v276_v23, 3  ;;  %v449_v36 = vsel %vm446_vm1, %v264_v7, %v268_v8 }
  0x2e   : > { %v475_v39 = vsel %vm471_vm6, %v384_v14, %v396_v28  ;;  %602 = vmatprep.subr.bf16.mxu1 %v491_v19  ;;  %v462_v40 = vsel %vm461_vm4, %v457_v32, %v369_v27  ;;  %v315_v41 = vmul.f32 %v282_v30, %v268_v8  ;;  %v454_v31 = vsel %vm451_vm2, %v449_v36, %v272_v21 }
  0x2f   : > { %v467_v42 = vsel %vm466_vm5, %v462_v40, %v381_v29  ;;  %v301_v38 = vsel %vm292_vm0, %v299_v33, %v300_v35  ;;  %v342_v43 = vmul.f32 %v338_v0, %v334_v63  ;;  %v346_v44 = vmul.f32 %v338_v0, %v326_v53 }
  0x30   : > { %v488_v45 = vpack.c.bf16 %v467_v42, %v1071_v52  ;;  %v311_v46 = vmul.f32 %v301_v38, %v282_v30  ;;  %v319_v47 = vsub.f32 1.0, %v315_v41  ;;  %v433_v48 = vrot.slane %v1108_v37, %v432_v34 }
  0x31   : > { %v350_v49 = vsub.f32 1.0, %v346_v44  ;;  %v406_v50 = vrot.slane %v342_v43, 6  ;;  %v344_v51 = vmul.f32 %v340_v13, %v336_v17  ;;  %v348_v54 = vmul.f32 %v340_v13, %v328_v2  ;;  %v924_v43 = vld [vmem:[%s1178_s1] sm:$0xff]   ;;  %v925_v44 = vld [vmem:[%s1178_s1 + $0x8] sm:$0xff]  }
  0x32   : > { %550 = vmatpush1.bf16.msra.mxu0 %v488_v45  ;;  %v323_v55 = vmul.f32 2.0, %v311_v46  ;;  %v359_v56 = vrot.slane %v311_v46, 2  ;;  %v371_v57 = vrot.slane %v319_v47, 7  ;;  %v440_v58 = vsub.s32 3, %v1051_v22 }
  0x33   : > { %v418_v59 = vrot.slane %v350_v49, 3  ;;  %v477_v53 = vsel %vm292_vm0, %v473_v24, %v406_v50  ;;  %v352_v52 = vsub.f32 1.0, %v348_v54  ;;  %v408_v60 = vrot.slane %v344_v51, 6 }
  0x34   : > { %v327_v62 = vmul.f32 %v323_v55, %v319_v47  ;;  %v459_v63 = vsel %vm456_vm3, %v276_v23, %v359_v56  ;;  %v441_v34 = vrot.slane %v1108_v37, %v440_v58  ;;  %v329_v0 = vmul.f32 %v321_v6, %v1078_v61 }
  0x35   : > { %v464_v1 = vsel %vm461_vm4, %v459_v63, %v371_v57  ;;  %v481_v2 = vsel %vm446_vm1, %v418_v59, %v433_v48  ;;  %v420_v3 = vrot.slane %v352_v52, 3  ;;  %v479_v4 = vsel %vm292_vm0, %v475_v39, %v408_v60 }
  0x36   : > { %v383_v5 = vrot.slane %v327_v62, 4  ;;  %v493_v7 = vpack.c.bf16 %v481_v2, %v477_v53  ;;  %v333_v8 = vsub.f32 1.0, %v329_v0  ;;  %v337_v9 = vmul.f32 2.0, %v1096_v20 }
  0x37   : > { %v483_v10 = vsel %vm446_vm1, %v420_v3, %v441_v34  ;;  %v428_v11 = vsub.s32 0, %v1051_v22  ;;  %v331_v13 = vmul.f32 %v323_v55, %v311_v46  ;;  %v339_v14 = vmul.f32 2.0, %v327_v62 }
  0x38   : > { %v469_v61 = vsel %vm466_vm5, %v464_v1, %v383_v5  ;;  %882 = vmatprep.subr.msk.bf16.mxu0 %vm451_vm2, %v493_v7  ;;  %v495_v6 = vpack.c.bf16 %v483_v10, %v479_v4  ;;  %v341_v15 = vmul.f32 %v337_v9, %v333_v8  ;;  %v345_v16 = vmul.f32 %v337_v9, %v1096_v20 }
  0x39   : > { %v490_v17 = vpack.c.bf16 %v469_v61, %v454_v31  ;;  %v393_v18 = vrot.slane %v333_v8, 1  ;;  %v429_v21 = vrot.slane %v1108_v37, %v428_v11  ;;  %v335_v23 = vsub.f32 1.0, %v331_v13 }
  0x3a   : > { %v349_v24 = vsub.f32 1.0, %v345_v16  ;;  %v405_v25 = vrot.slane %v341_v15, 6  ;;  %v347_v26 = vmul.f32 %v339_v14, %v327_v62  ;;  %v436_v27 = vsub.s32 2, %v1051_v22 }
  0x3b   : > { %603 = vmatpush1.bf16.msra.mxu1 %v490_v17  ;;  %v472_v28 = vsel %vm471_vm6, %v381_v29, %v393_v18  ;;  %v343_v19 = vmul.f32 %v339_v14, %v335_v23  ;;  %v395_v30 = vrot.slane %v335_v23, 1 }
  0x3c   : > { %885 = vmatprep.subr.msk.bf16.mxu1 %vm451_vm2, %v495_v6  ;;  %v417_v32 = vrot.slane %v349_v24, 3  ;;  %v476_v33 = vsel %vm292_vm0, %v472_v28, %v405_v25  ;;  %v351_v35 = vsub.f32 1.0, %v347_v26  ;;  %v437_v36 = vrot.slane %v1108_v37, %v436_v27 }
  0x3d   : > { %v407_v39 = vrot.slane %v343_v19, 6  ;;  %v474_v40 = vsel %vm471_vm6, %v383_v5, %v395_v30 }
  0x3e   : > { %v480_v22 = vsel %vm446_vm1, %v417_v32, %v429_v21  ;;  %v419_v41 = vrot.slane %v351_v35, 3 }
  0x3f   : > { %v492_v31 = vpack.c.bf16 %v480_v22, %v476_v33  ;;  %v478_v20 = vsel %vm292_vm0, %v474_v40, %v407_v39 }
  0x40   : > { %v482_v29 = vsel %vm446_vm1, %v419_v41, %v437_v36 }
  0x41   : > { %v538_v42 = vsel %vm451_vm2, %v492_v31, 0  ;;  %v494_v38 = vpack.c.bf16 %v482_v29, %v478_v20 }
  0x42   : > { %552 = vmatpush1.bf16.msra.mxu0 %v538_v42 }
  0x43   : > { %v544_v37 = vsel %vm451_vm2, %v494_v38, 0  ;;  %v671_v38 = vld [vmem:[%s1180_s3] sm:$0x3] }
  0x44   : > { %605 = vmatpush1.bf16.msra.mxu1 %v544_v37 }
  0x45   : > { %883 = vmatmul.mubr.msk.bf16.vlgmr.msra.gmra.mrb[0].mxu0 %vm530_vm7, %v924_v43 }
  0x46   : > { %591 = vmatprep.mubr.bf16.mxu0 %v966_v12 }
  0x47   : > { %886 = vmatmul.mubr.msk.bf16.vlgmr.msra.gmra.mrb[0].mxu1 %vm530_vm7, %v924_v43 }
  0x48   : > { %644 = vmatprep.mubr.bf16.mxu1 %v966_v12 }
  0x4d   : > { %884 = vmatmul.mubr.msk.bf16.gmra.mrb[4].mxu0 %vm530_vm7, %v925_v44 }
  0x4e   : > { %722 = vmatprep.mubr.bf16.mxu0 %v966_v12 }
  0x4f   : > { %887 = vmatmul.mubr.msk.bf16.gmra.mrb[4].mxu1 %vm530_vm7, %v925_v44 }
  0x50   : > { %763 = vmatprep.mubr.bf16.mxu1 %v966_v12 }
  0x9c   : > { %v503_v45 = vpop.permute.xlu0 %502  ;;  %v513_v47 = vpop.permute.xlu1 %512 }
  0xa0   : > { %v508_v48 = vpop.permute.xlu0 %507  ;;  %v518_v13 = vpop.permute.xlu1 %517 }
  0xa4   : > { %v684_v43 = vpop.permute.xlu0 %683 }
 0x118   : > { %v583_v46 = vpop.f32.mrb[0].mxu0 }
 0x119   : > { %v584_v49 = vadd.f32 %v583_v46, %v503_v45  ;;  %v585_v50 = vpop.f32.mrb[1].mxu0 }
 0x11a   : > { %v636_v51 = vpop.f32.mrb[0].mxu1  ;;  %v586_v54 = vadd.f32 %v585_v50, %v503_v45  ;;  %v587_v55 = vpop.f32.mrb[2].mxu0 }
 0x11b   : > { %v637_v56 = vadd.f32 %v636_v51, %v503_v45  ;;  %v638_v57 = vpop.f32.mrb[1].mxu1  ;;  %v588_v58 = vadd.f32 %v587_v55, %v508_v48  ;;  %v589_v59 = vpop.f32.mrb[3].mxu0  ;;  %v655_v62 = vmax.f32 %v584_v49, 0.0 }
 0x11c   : > { %v639_v53 = vadd.f32 %v638_v57, %v503_v45  ;;  %v640_v52 = vpop.f32.mrb[2].mxu1  ;;  %v590_v60 = vadd.f32 %v589_v59, %v508_v48  ;;  %v656_v1 = vmax.f32 %v586_v54, 0.0 }
 0x11d   : > { %v657_v63 = vmax.f32 %v637_v56, 0.0  ;;  %v659_v34 = vmax.f32 %v588_v58, 0.0  ;;  %v641_v12 = vadd.f32 %v640_v52, %v508_v48  ;;  %v642_v0 = vpop.f32.mrb[3].mxu1 }
 0x11e   : > { %v660_v2 = vmax.f32 %v590_v60, 0.0  ;;  %v643_v3 = vadd.f32 %v642_v0, %v508_v48  ;;  %v658_v7 = vmax.f32 %v639_v53, 0.0 }
 0x11f   : > { %v672_v4 = vpack.c.bf16 %v659_v34, %v655_v62  ;;  %v661_v5 = vmax.f32 %v641_v12, 0.0 }
 0x120   : > { %v673_v8 = vpack.c.bf16 %v660_v2, %v656_v1  ;;  %v662_v9 = vmax.f32 %v643_v3, 0.0  ;;  %v593_v10 = vpop.f32.mrb[4].mxu0 }
 0x121   : > { %v674_v11 = vpack.c.bf16 %v661_v5, %v657_v63  ;;  %v594_v14 = vadd.f32 %v593_v10, %v513_v47  ;;  %v595_v61 = vpop.f32.mrb[5].mxu0 }
 0x122   : > { %v675_v6 = vpack.c.bf16 %v662_v9, %v658_v7  ;;  %v646_v15 = vpop.f32.mrb[4].mxu1  ;;  %v596_v16 = vadd.f32 %v595_v61, %v513_v47  ;;  %v597_v17 = vpop.f32.mrb[6].mxu0  ;;  %690 = vmatprep.subr.bf16.mxu0 %v673_v8 }
 0x123   : > { %v647_v18 = vadd.f32 %v646_v15, %v513_v47  ;;  %v648_v21 = vpop.f32.mrb[5].mxu1  ;;  %v598_v23 = vadd.f32 %v597_v17, %v518_v13  ;;  %v599_v24 = vpop.f32.mrb[7].mxu0  ;;  %691 = vmatpush1.bf16.msra.mxu0 %v672_v4  ;;  %v663_v28 = vmax.f32 %v594_v14, 0.0 }
 0x124   : > { %v649_v25 = vadd.f32 %v648_v21, %v513_v47  ;;  %v650_v26 = vpop.f32.mrb[6].mxu1  ;;  %731 = vmatprep.subr.bf16.mxu1 %v675_v6  ;;  %v600_v27 = vadd.f32 %v599_v24, %v518_v13  ;;  %v664_v33 = vmax.f32 %v596_v16, 0.0 }
 0x125   : > { %v667_v19 = vmax.f32 %v598_v23, 0.0  ;;  %v651_v30 = vadd.f32 %v650_v26, %v518_v13  ;;  %v652_v32 = vpop.f32.mrb[7].mxu1  ;;  %732 = vmatpush1.bf16.msra.mxu1 %v674_v11  ;;  %v665_v39 = vmax.f32 %v647_v18, 0.0 }
 0x126   : > { %v668_v35 = vmax.f32 %v600_v27, 0.0  ;;  %v653_v36 = vadd.f32 %v652_v32, %v518_v13  ;;  %v666_v41 = vmax.f32 %v649_v25, 0.0 }
 0x127   : > { %v676_v40 = vpack.c.bf16 %v667_v19, %v663_v28  ;;  %v669_v22 = vmax.f32 %v651_v30, 0.0 }
 0x128   : > { %v677_v31 = vpack.c.bf16 %v668_v35, %v664_v33  ;;  %v670_v20 = vmax.f32 %v653_v36, 0.0 }
 0x129   : > { %v678_v29 = vpack.c.bf16 %v669_v22, %v665_v39 }
 0x12a   : > { %v679_v42 = vpack.c.bf16 %v670_v20, %v666_v41  ;;  %692 = vmatprep.subr.bf16.mxu0 %v677_v31 }
 0x12b   : > { %693 = vmatpush1.bf16.msra.mxu0 %v676_v40 }
 0x12c   : > { %733 = vmatprep.subr.bf16.mxu1 %v679_v42 }
 0x12d   : > { %734 = vmatpush1.bf16.msra.mxu1 %v678_v29 }
 0x12e   : > { %888 = vmatmul.mubr.msk.bf16.vlgmr.msra.gmra.mrb[8].mxu0 %vm686_vm8, %v671_v38 }
 0x130   : > { %889 = vmatmul.mubr.msk.bf16.vlgmr.msra.gmra.mrb[8].mxu1 %vm686_vm8, %v671_v38 }
 0x201   : > { %v724_v37 = vpop.f32.mrb[8].mxu0 }
 0x202   : > { %v725_v44 = vadd.f32 %v724_v37, %v684_v43  ;;  %v726_v45 = vpop.f32.mrb[9].mxu0 }
 0x203   : > { %v765_v46 = vpop.f32.mrb[8].mxu1  ;;  %v727_v47 = vadd.f32 %v726_v45, %v684_v43  ;;  %v728_v48 = vpop.f32.mrb[10].mxu0 }
 0x204   : > { %v890_v49 = vmul.f32 -1.442695, %v725_v44  ;;  %v766_v50 = vadd.f32 %v765_v46, %v684_v43  ;;  %v767_v51 = vpop.f32.mrb[9].mxu1  ;;  %v729_v54 = vpop.f32.mrb[11].mxu0 }
 0x205   : > { %v891_v55 = vmul.f32 -1.442695, %v727_v47  ;;  %v768_v56 = vadd.f32 %v767_v51, %v684_v43  ;;  %v769_v57 = vpop.f32.mrb[10].mxu1 }
 0x206   : > { %926 = vpow2.f32 %v890_v49  ;;  %v892_v58 = vmul.f32 -1.442695, %v766_v50  ;;  %v770_v59 = vpop.f32.mrb[11].mxu1 }
 0x207   : > { %928 = vpow2.f32 %v891_v55  ;;  %v893_v53 = vmul.f32 -1.442695, %v768_v56 }
 0x208   : > { %930 = vpow2.f32 %v892_v58 }
 0x209   : > { %932 = vpow2.f32 %v893_v53 }
 0x210   : > { %v927_v52 = vpop.eup %926 }
 0x211   : > { %v929_v60 = vpop.eup %928  ;;  %v784_v62 = vadd.f32 1.0, %v927_v52 }
 0x212   : > { %v931_v63 = vpop.eup %930  ;;  %v785_v34 = vadd.f32 1.0, %v929_v60 }
 0x213   : > { %v933_v12 = vpop.eup %932  ;;  %934 = vrcp.f32 %v784_v62  ;;  %v786_v0 = vadd.f32 1.0, %v931_v63 }
 0x214   : > { %936 = vrcp.f32 %v785_v34  ;;  %v787_v1 = vadd.f32 1.0, %v933_v12 }
 0x215   : > { %938 = vrcp.f32 %v786_v0 }
 0x216   : > { %940 = vrcp.f32 %v787_v1 }
 0x21d   : > { %v935_v2 = vpop.eup %934 }
 0x21e   : > { %v937_v3 = vpop.eup %936 }
 0x21f   : > { %v939_v4 = vpop.eup %938  ;;  %v800_v5 = vcombine.low %v935_v2, %v937_v3 }
 0x220   : > { %v941_v7 = vpop.eup %940 }
 0x221   : > { %804 = vst [vmem:[%s259_s20] sm:$0x77] %v800_v5  ;;  %v801_v8 = vcombine.low %v939_v4, %v941_v7 }
 0x223   : > { %805 = vst [vmem:[%s259_s20 + $0x8] sm:$0x77] %v801_v8 }
 0x224 PF: > { %p12_p9 = scmp.ge.s32.totalorder %s1014_s22, 4   ;;  %s1183_s18 = smov %s960_s19 }
 0x225   : > { %s1184_s19 = smov %s1023_s25  ;;  %s1185_s20 = smov %s1014_s22 }
 0x226   :  { %14 = sbr.rel (!%p12_p9) target bundleno = 2 (0x2), region = 99 }

</bundles_post_ra>
